<compile_context>
chip_gen: v6e
topology: v6e:2x2x1
jax: 0.10.0
libtpu: 0.0.40
codegen_flags: <defaults>
</compile_context>

<pallas_src>
import math
import jax
import jax.numpy as jnp
from jax.experimental import pallas as pl
from jax.experimental.pallas import tpu as pltpu


def _round_up(x, m):
    return ((x + m - 1) // m) * m


def _pad_to(a, shape, dtype):
    """Cast to dtype and zero-pad up to `shape` (no copy if already that shape/dtype)."""
    a = a.astype(dtype)
    if a.shape == tuple(shape):
        return a
    out = jnp.zeros(shape, dtype)
    return out.at[tuple(slice(0, s) for s in a.shape)].set(a)


def _choose_tile(dim, max_tile, align):
    """Largest multiple of `align` that divides `dim` and is <= max_tile.

    `dim` is always a multiple of `align`, so `align` itself is a valid fallback.
    """
    if dim <= max_tile:
        return dim
    t = (max_tile // align) * align
    while t > align:
        if dim % t == 0:
            return t
        t -= align
    return align


def _vmem_footprint(tm, tn, tk, out_bytes, with_acc):
    """Estimated VMEM bytes with 2-deep buffering on all operands + f32 accumulator."""
    per_step = tm * tk * 2 + tk * tn * 2 + tn * 4 + tm * tn * out_bytes
    total = 2 * per_step
    if with_acc:
        total += tm * tn * 4
    return total


def _select_tiles(B_pad, K_pad, N_pad, out_bytes,
                  tm_max=256, tn_max=2048, tk_max=2048,
                  vmem_budget=36 * 1024 * 1024):
    tm = _choose_tile(B_pad, tm_max, 16)
    tn = _choose_tile(N_pad, tn_max, 128)
    tk = _choose_tile(K_pad, tk_max, 128)

    # v7x megacore: with a single i-program, make sure the "parallel" j axis has
    # at least 2 programs so both TensorCores get work (harmless on v5e/v6e).
    if (B_pad // tm) == 1 and (N_pad // tn) == 1 and N_pad >= 256:
        tn2 = _choose_tile(N_pad, N_pad // 2, 128)
        if N_pad // tn2 >= 2:
            tn = tn2

    with_acc = (K_pad // tk) > 1
    # Shrink (keeping divisibility) until the footprint fits the VMEM budget.
    while _vmem_footprint(tm, tn, tk, out_bytes, with_acc) > vmem_budget:
        if tk >= tn and tk > 128:
            tk = _choose_tile(K_pad, max(tk // 2, 128), 128)
        elif tn > 128:
            tn = _choose_tile(N_pad, max(tn // 2, 128), 128)
        elif tm > 16:
            tm = _choose_tile(B_pad, max(tm // 2, 16), 16)
        else:
            break
        with_acc = (K_pad // tk) > 1
    return tm, tn, tk


def _linear_kernel_multi_k(x_ref, w_ref, b_ref, o_ref, acc_ref):
    k = pl.program_id(2)

    @pl.when(k == 0)
    def _init():
        # Fold the bias into the accumulator init (saves a full tm x tn f32 add
        # in the epilogue).
        acc_ref[...] = jnp.broadcast_to(b_ref[...], acc_ref.shape)

    # bf16 x bf16 -> f32 accumulate on the MXU.
    acc_ref[...] += jnp.dot(
        x_ref[...], w_ref[...], preferred_element_type=jnp.float32
    )

    @pl.when(k == pl.num_programs(2) - 1)
    def _finalize():
        o_ref[...] = acc_ref[...].astype(o_ref.dtype)


def _linear_kernel_single_k(x_ref, w_ref, b_ref, o_ref):
    # Single K step: no f32 scratch round-trip needed.
    acc = jnp.dot(x_ref[...], w_ref[...], preferred_element_type=jnp.float32)
    o_ref[...] = (acc + b_ref[...]).astype(o_ref.dtype)


def prepare_linear_params(w, b):
    """Pre-pad / pre-cast params once (hoisted out of the per-call path).

    w: (in_dim, out_dim) float -> (K_pad, N_pad) bf16
    b: (1, out_dim) or (out_dim,) float -> (1, N_pad) f32
    """
    K, N = w.shape
    K_pad = _round_up(K, 128)
    N_pad = _round_up(N, 128)
    wp = _pad_to(w, (K_pad, N_pad), jnp.bfloat16)
    bp = _pad_to(jnp.reshape(b, (1, -1)), (1, N_pad), jnp.float32)
    return wp, bp


def linear_pallas(x, wp, bp, out_dim, *, tm_max=256, tn_max=2048, tk_max=2048):
    """y = x @ W + b with pre-padded bf16 W (K_pad, N_pad) and f32 b (1, N_pad)."""
    B, K = x.shape
    K_pad, N_pad = wp.shape
    assert K <= K_pad and out_dim <= N_pad
    out_dtype = x.dtype
    out_bytes = jnp.dtype(out_dtype).itemsize

    B_pad = _round_up(max(B, 1), 16)
    xp = _pad_to(x, (B_pad, K_pad), jnp.bfloat16)

    tm, tn, tk = _select_tiles(B_pad, K_pad, N_pad, out_bytes, tm_max, tn_max, tk_max)
    grid_i, grid_j, grid_k = B_pad // tm, N_pad // tn, K_pad // tk

    # Explicit limit: above v5e's 16 MiB scoped default, <= ~half of v7x's 64 MiB
    # physical VMEM so the compiler keeps headroom for its own scratch.
    vmem_limit = 40 * 1024 * 1024

    if grid_k == 1:
        y = pl.pallas_call(
            _linear_kernel_single_k,
            out_shape=jax.ShapeDtypeStruct((B_pad, N_pad), out_dtype),
            grid_spec=pltpu.PrefetchScalarGridSpec(
                num_scalar_prefetch=0,
                grid=(grid_i, grid_j),
                in_specs=[
                    pl.BlockSpec((tm, tk), lambda i, j: (i, 0)),
                    pl.BlockSpec((tk, tn), lambda i, j: (0, j)),
                    pl.BlockSpec((1, tn), lambda i, j: (0, j)),
                ],
                out_specs=pl.BlockSpec((tm, tn), lambda i, j: (i, j)),
            ),
            compiler_params=pltpu.CompilerParams(
                dimension_semantics=("parallel", "parallel"),
                vmem_limit_bytes=vmem_limit,
            ),
        )(xp, wp, bp)
    else:
        y = pl.pallas_call(
            _linear_kernel_multi_k,
            out_shape=jax.ShapeDtypeStruct((B_pad, N_pad), out_dtype),
            grid_spec=pltpu.PrefetchScalarGridSpec(
                num_scalar_prefetch=0,
                grid=(grid_i, grid_j, grid_k),
                in_specs=[
                    pl.BlockSpec((tm, tk), lambda i, j, k: (i, k)),
                    pl.BlockSpec((tk, tn), lambda i, j, k: (k, j)),
                    pl.BlockSpec((1, tn), lambda i, j, k: (0, j)),
                ],
                out_specs=pl.BlockSpec((tm, tn), lambda i, j, k: (i, j)),
                scratch_shapes=[pltpu.VMEM((tm, tn), jnp.float32)],
            ),
            compiler_params=pltpu.CompilerParams(
                dimension_semantics=("parallel", "parallel", "arbitrary"),
                vmem_limit_bytes=vmem_limit,
            ),
        )(xp, wp, bp)

    # Strip wrapper-side padding.
    return y[:B, :out_dim]


def init_linear_params(key, in_dim, out_dim, dtype=jnp.float32):
    """Deterministic init matching nn.Linear's kaiming-uniform scheme."""
    kw, kb = jax.random.split(key)
    bound_w = math.sqrt(1.0 / in_dim)  # kaiming_uniform(a=sqrt(5)) -> U(-1/sqrt(fan_in), ..)
    w = jax.random.uniform(kw, (in_dim, out_dim), dtype, -bound_w, bound_w)
    bound_b = 1.0 / math.sqrt(in_dim)
    b = jax.random.uniform(kb, (1, out_dim), dtype, -bound_b, bound_b)
    return w, b


class LinearLayer:
    """JAX/Pallas equivalent of the PyTorch LinearLayer module (Sequential(Linear))."""

    def __init__(self, in_dim, out_dim, key):
        self.in_dim, self.out_dim = in_dim, out_dim
        # f32 copies kept only for reference checks.
        self.w, self.b = init_linear_params(key, in_dim, out_dim)
        # Hoisted per-call work: weight pre-transposed, pre-padded, bf16; bias pre-padded f32.
        # TODO(synk): optional fp8 (v7x) / int8 (v5e/v6e) weight path for weight-streaming regime.
        self.wp, self.bp = prepare_linear_params(self.w, self.b)

    def __call__(self, x):
        return linear_pallas(x, self.wp, self.bp, self.out_dim)


if __name__ == "__main__":
    key = jax.random.PRNGKey(0)
    k_in, k_params, k_in2, k_params2 = jax.random.split(key, 4)

    # Small shapes consistent with the module: x is (batch, in_dim).
    batch, in_dim, out_dim = 8, 32, 16
    x = jax.random.normal(k_in, (batch, in_dim), jnp.float32)

    layer = LinearLayer(in_dim, out_dim, k_params)
    y = jax.block_until_ready(layer(x))

    assert y.shape == (batch, out_dim)
    # Exact-path reference (bf16-quantized inputs, f32 accumulate) -- tight.
    y_ref_bf16 = (
        x.astype(jnp.bfloat16).astype(jnp.float32)
        @ layer.w.astype(jnp.bfloat16).astype(jnp.float32)
        + layer.b
    )
    assert jnp.allclose(y, y_ref_bf16, atol=1e-4, rtol=1e-4)
    # Full-precision reference -- loose (bf16 MXU inputs).
    y_ref = x @ layer.w + layer.b
    assert jnp.allclose(y, y_ref, atol=2e-2, rtol=2e-2)

    # Also exercise the multi-K (accumulator) kernel path with a reduced tk_max.
    batch2, in2, out2 = 16, 256, 128
    x2 = jax.random.normal(k_in2, (batch2, in2), jnp.float32)
    layer2 = LinearLayer(in2, out2, k_params2)
    y2 = jax.block_until_ready(
        linear_pallas(x2, layer2.wp, layer2.bp, out2, tk_max=128)
    )
    y2_ref_bf16 = (
        x2.astype(jnp.bfloat16).astype(jnp.float32)
        @ layer2.w.astype(jnp.bfloat16).astype(jnp.float32)
        + layer2.b
    )
    assert y2.shape == (batch2, out2)
    assert jnp.allclose(y2, y2_ref_bf16, atol=1e-4, rtol=1e-4)

    print("KERNEL_OK")
</pallas_src>

<mosaic_0001>
module attributes {stable_mosaic.version = 11 : i64} {
  func.func @_linear_kernel_single_k(%arg0: i32, %arg1: i32, %arg2: memref<16x128xbf16, #tpu.memory_space<vmem>>, %arg3: memref<128x128xbf16, #tpu.memory_space<vmem>>, %arg4: memref<1x128xf32, #tpu.memory_space<vmem>>, %arg5: memref<16x128xf32, #tpu.memory_space<vmem>>) attributes {dimension_semantics = [#tpu.dimension_semantics<parallel>, #tpu.dimension_semantics<parallel>], iteration_bounds = array<i64: 1, 1>, scalar_prefetch = 0 : i64, scratch_operands = 0 : i64, tpu.core_type = #tpu.core_type<tc>, window_params = [{transform_indices = @transform_0, window_bounds = array<i64: 16, 128>}, {transform_indices = @transform_1, window_bounds = array<i64: 128, 128>}, {transform_indices = @transform_2, window_bounds = array<i64: 1, 128>}, {transform_indices = @transform_3, window_bounds = array<i64: 16, 128>}]} {
    %c0 = arith.constant 0 : index
    %c0_0 = arith.constant 0 : index
    %0 = vector.load %arg2[%c0, %c0_0] : memref<16x128xbf16, #tpu.memory_space<vmem>>, vector<16x128xbf16>
    %c0_1 = arith.constant 0 : index
    %c0_2 = arith.constant 0 : index
    %1 = vector.load %arg3[%c0_1, %c0_2] : memref<128x128xbf16, #tpu.memory_space<vmem>>, vector<128x128xbf16>
    %cst = arith.constant dense<0.000000e+00> : vector<16x128xf32>
    %2 = tpu.matmul %0, %1, %cst {dimension_numbers = #tpu.dot_dimension_numbers<[1], [0], [0], [1], [0, 0, 1, 1], [], []>} : vector<16x128xbf16>, vector<128x128xbf16>, vector<16x128xf32> -> vector<16x128xf32>
    %c0_3 = arith.constant 0 : index
    %c0_4 = arith.constant 0 : index
    %3 = vector.load %arg4[%c0_3, %c0_4] : memref<1x128xf32, #tpu.memory_space<vmem>>, vector<1x128xf32>
    %4 = vector.broadcast %3 : vector<1x128xf32> to vector<16x128xf32>
    %5 = arith.addf %2, %4 : vector<16x128xf32>
    %c0_5 = arith.constant 0 : index
    %c0_6 = arith.constant 0 : index
    %6 = vector.load %arg5[%c0_5, %c0_6] : memref<16x128xf32, #tpu.memory_space<vmem>>, vector<16x128xf32>
    tpu.vector_store %arg5[%c0_5, %c0_6], %5 {strides = array<i32>} : memref<16x128xf32, #tpu.memory_space<vmem>>, vector<16x128xf32>,
    return
  }
  func.func @transform_0(%arg0: i32, %arg1: i32) -> (i32, i32) {
    %c0_i32 = arith.constant 0 : i32
    %c0_i32_0 = arith.constant 0 : i32
    return %arg0, %c0_i32 : i32, i32
  }
  func.func @transform_1(%arg0: i32, %arg1: i32) -> (i32, i32) {
    %c0_i32 = arith.constant 0 : i32
    %c0_i32_0 = arith.constant 0 : i32
    return %c0_i32, %arg1 : i32, i32
  }
  func.func @transform_2(%arg0: i32, %arg1: i32) -> (i32, i32) {
    %c0_i32 = arith.constant 0 : i32
    %c0_i32_0 = arith.constant 0 : i32
    return %c0_i32, %arg1 : i32, i32
  }
  func.func @transform_3(%arg0: i32, %arg1: i32) -> (i32, i32) {
    %c0_i32 = arith.constant 0 : i32
    return %arg0, %arg1 : i32, i32
  }
}

</mosaic_0001>

<bundles_post_ra>
// kernel: tpu_custom_call.1
= control target key start
LH: loop header
LB: loop body
LE: loop exit
PB: predicated region body
PF: predicated region fallthrough
CT: control target
= control target key end

     0   :  { %8 = vsyncpa [#allocation3], 0  ;;  %s348_s0 = inlined_call_operand.hbm [shape: bf16[16,128], index: 0, kind: input, shape index: {}]   ;;  %s349_s1 = inlined_call_operand.hbm [shape: bf16[128,128], index: 1, kind: input, shape index: {}]   ;;  %s350_s2 = inlined_call_operand.vmem [shape: f32[1,128], index: 2, kind: input, shape index: {}]   ;;  %s351_s3 = inlined_call_operand.hbm [shape: f32[16,128], index: 3, kind: output, shape index: {}]  }
   0x1   :  { %9 = vsyncpa [#allocation6], 0 }
   0x2   :  { %10 = vsyncpa [#allocation4], 0  ;;  %s307_s12 = smov [#allocation2]  }
   0x3   :  { %s16_s13 = sshll.u32 %s307_s12, 4  ;;  %s17_s13 = int_to_ptr.vmem [resolvable:$true] %s16_s13 }
   0x4   :  { %s249_s14 = scalar_lea.vmem %s17_s13, 128  ;;  %p254_p1 = scmp.lt.s32.totalorder %s17_s13, %s17_s13 }
   0x5   :  { %p250_p0 = scmp.ne.s32.totalorder %s17_s13, %s249_s14  ;;  %p255_p2 = scmp.lt.s32.totalorder %s249_s14, %s249_s14 }
   0x7   :  { %p256_p3 = por %p255_p2, %p254_p1 }
   0x9   :  { %p257_p4 = pnand %p256_p3, %p250_p0 }
   0xb   :  { %260 = shalt.err (!%p257_p4)
}
   0xc   :  { %s308_s15 = smov 64   ;;  %s309_s16 = smov 4  }
   0xd   :  { %22 = dma.hbm_to_vmem [thread:$0]  %s348_s0, 128, %s17_s13, [#allocation3], %s308_s15, %s308_s15, %s309_s16  }
   0xe   :  { %s310_s19 = smov [#allocation5]  }
   0xf   :  { %s28_s20 = sshll.u32 %s310_s19, 4  ;;  %s29_s20 = int_to_ptr.vmem [resolvable:$true] %s28_s20 }
  0x10   :  { %s269_s21 = scalar_lea.vmem %s29_s20, 1024  ;;  %p274_p6 = scmp.lt.s32.totalorder %s29_s20, %s29_s20 }
  0x11   :  { %p270_p5 = scmp.ne.s32.totalorder %s29_s20, %s269_s21  ;;  %p275_p7 = scmp.lt.s32.totalorder %s269_s21, %s269_s21 }
  0x13   :  { %p276_p8 = por %p275_p7, %p274_p6 }
  0x15   :  { %p277_p9 = pnand %p276_p8, %p270_p5 }
  0x17   :  { %280 = shalt.err (!%p277_p9)
}
  0x18   :  { %34 = dma.hbm_to_vmem [thread:$0]  %s349_s1, 1024, %s29_s20, [#allocation6], %s308_s15, %s308_s15, %s309_s16  }
  0x19   :  { %301 = dma.done.wait [#allocation3], 128  }
  0x1a   :  { %302 = vsyncadd [#allocation3], 4294967168 }
  0x1b   :  { %303 = dma.done.wait [#allocation6], 1024  }
  0x1c   :  { %304 = vsyncadd [#allocation6], 4294966272  ;;  %v311_v0 = vmov 0.0   ;;  %vm312_vm0 = vmmov 0   ;;  %v232_v1 = vld [vmem:[#allocation5 + $0x38] sm:$0xff]   ;;  %v233_v2 = vld [vmem:[#allocation5 + $0x30] sm:$0xff]  }
  0x1d   :  { %203 = vmatprep.subr.bf16.mxu0 %v311_v0  ;;  %219 = vmatprep.mubr.msk.bf16.mxu0 %vm312_vm0, %v311_v0  ;;  %v234_v3 = vld [vmem:[#allocation5 + $0x28] sm:$0xff]   ;;  %v235_v4 = vld [vmem:[#allocation5 + $0x20] sm:$0xff]   ;;  %v236_v5 = vld [vmem:[#allocation5 + $0x18] sm:$0xff]   ;;  %s313_s24 = smov [#allocation7]  }
  0x1e   :  { %204 = vmatpush3.bf16.msra.mxu0 %v232_v1  ;;  %v237_v6 = vld [vmem:[#allocation5 + $0x10] sm:$0xff]   ;;  %v238_v7 = vld [vmem:[#allocation5 + $0x8] sm:$0xff]   ;;  %v239_v8 = vld [vmem:[#allocation5] sm:$0xff]   ;;  %s171_s25 = sshll.u32 %s313_s24, 4  ;;  %s172_s25 = int_to_ptr.vmem [resolvable:$true] %s171_s25 }
  0x1f   :  { %205 = vmatprep.subr.bf16.mxu0 %v311_v0  ;;  %v240_v9 = vld [vmem:[#allocation2] sm:$0xff]   ;;  %s281_s26 = scalar_lea.vmem %s172_s25, 256  ;;  %p286_p11 = scmp.lt.s32.totalorder %s172_s25, %s172_s25 }
  0x20   :  { %v184_v10 = vld [vmem:[%s350_s2] ss:$0 sm:$0xff]  ;;  %p282_p10 = scmp.ne.s32.totalorder %s172_s25, %s281_s26  ;;  %p287_p12 = scmp.lt.s32.totalorder %s281_s26, %s281_s26 }
  0x22   :  { %206 = vmatpush3.bf16.msra.mxu0 %v233_v2  ;;  %p288_p13 = por %p287_p12, %p286_p11 }
  0x23   :  { %207 = vmatprep.subr.bf16.mxu0 %v311_v0 }
  0x24   :  { %p289_p0 = pnand %p288_p13, %p282_p10 }
  0x26   :  { %208 = vmatpush3.bf16.msra.mxu0 %v234_v3 }
  0x27   :  { %209 = vmatprep.subr.bf16.mxu0 %v311_v0 }
  0x2a   :  { %210 = vmatpush3.bf16.msra.mxu0 %v235_v4 }
  0x2b   :  { %211 = vmatprep.subr.bf16.mxu0 %v311_v0 }
  0x2e   :  { %212 = vmatpush3.bf16.msra.mxu0 %v236_v5 }
  0x2f   :  { %213 = vmatprep.subr.bf16.mxu0 %v311_v0 }
  0x32   :  { %214 = vmatpush3.bf16.msra.mxu0 %v237_v6 }
  0x33   :  { %215 = vmatprep.subr.bf16.mxu0 %v311_v0 }
  0x36   :  { %216 = vmatpush3.bf16.msra.mxu0 %v238_v7 }
  0x37   :  { %217 = vmatprep.subr.bf16.mxu0 %v311_v0 }
  0x3a   :  { %218 = vmatpush3.bf16.msra.mxu0 %v239_v8 }
  0x3d   :  { %220 = vmatmul.mubr.bf16.vlgmr.msra.gmra.mxu0 %v240_v9 }
  0xfd   :  { %v157_v11 = vpop.f32.mrf.mxu0 }
  0xfe   :  { %v158_v12 = vadd.f32 %v184_v10, %v157_v11 }
  0xff   :  { %v221_v13 = vpop.f32.mrf.mxu0 }
 0x100   :  { %164 = vst [vmem:[#allocation7] sm:$0xff] %v158_v12 }
 0x101   :  { %v160_v14 = vpop.f32.mrf.mxu0 }
 0x102   :  { %v161_v15 = vadd.f32 %v184_v10, %v160_v14 }
 0x103   :  { %v222_v16 = vpop.f32.mrf.mxu0 }
 0x104   :  { %165 = vst [vmem:[#allocation7 + $0x8] sm:$0xff] %v161_v15 }
 0x105   :  { %292 = shalt.err (!%p289_p0)
}
 0x106   :  { %s314_s27 = smov 128   ;;  %s315_s2 = smov 8  }
 0x107   :  { %177 = dma.vmem_to_hbm [thread:$0]  %s172_s25, 256, %s351_s3, [#allocation4], %s314_s27, %s314_s27, %s315_s2  }
 0x108   :  { %305 = dma.done.wait [#allocation4], 256  }
 0x109   :  { %306 = vsyncadd [#allocation4], 4294967040 }
 0x10a   :  { %181 = vsyncpa [#allocation3], 1 }
 0x10b   :  { %182 = vsyncpa [#allocation6], 1 }
 0x10c   :  { %183 = vsyncpa [#allocation4], 1 }

</bundles_post_ra>
